<compile_context>
chip_gen: v5e
topology: v5e:2x2
jax: 0.10.0
libtpu: 0.0.40
codegen_flags: <defaults>
</compile_context>

<pallas_src>
import functools
import math

import jax
import jax.numpy as jnp
from jax import lax
from jax.experimental import pallas as pl
from jax.experimental.pallas import tpu as pltpu


# ----------------------------------------------------------------------------
# Fused TCN kernel helpers (trace-time Python; everything stays as VMEM values
# inside the single kernel body).
# ----------------------------------------------------------------------------
def _shifted_tap(x, shift, t_idx, L):
    """Row r of the result is x[r - shift]; rows whose within-batch time index
    (r % L) is < shift are zeroed (causal zero pad / batch boundary of the
    merged [B*L, C] slab).  Uses an XLU roll + VPU select, no VMEM copies."""
    if shift == 0:
        return x
    if shift >= L:                                   # entire tap is causal pad
        return jnp.zeros_like(x)
    rolled = pltpu.roll(x, shift, axis=0)            # rolled[r] = x[(r-shift)%BL]
    # Mask zeroes every row with t_idx < shift, which includes all wrap-around
    # rows, so the circular roll is exactly the causal shift.
    return jnp.where(t_idx >= shift, rolled, 0.0)


def _causal_dilated_conv(x, w_ref, b, *, dilation, kernel_size, t_idx, L):
    """out[t] = sum_k x[t - (K-1-k)*dilation] @ W[k] + b, as K accumulated
    bf16 MXU dots (no im2col lane concat)."""
    acc = None
    for k in range(kernel_size):
        shift = (kernel_size - 1 - k) * dilation
        tap = _shifted_tap(x, shift, t_idx, L).astype(jnp.bfloat16)
        d = jnp.dot(tap, w_ref[k], preferred_element_type=jnp.float32)
        acc = d if acc is None else acc + d
    return acc + b


def _tcn_fused_kernel(tok_ref, emb_ref, *rest,
                      B, L, kernel_size, dilations, has_ds):
    refs = list(rest)
    o_ref = refs.pop()                               # output: (B, C_out)

    BL = B * L
    V = emb_ref.shape[0]

    # Embedding lookup as a one-hot matmul (f32 -> bit-exact lookup values).
    tok = tok_ref[...]                               # (B*L, 1) int32
    vocab_iota = lax.broadcasted_iota(jnp.int32, (BL, V), 1)
    onehot = (tok == vocab_iota).astype(jnp.float32)  # (B*L, V)
    x = jnp.dot(onehot, emb_ref[...], preferred_element_type=jnp.float32)

    # Within-batch time index of every row of the merged slab (in-kernel iota,
    # no HBM input needed).
    t_idx = lax.broadcasted_iota(jnp.int32, (BL, 1), 0) % L

    idx = 0
    for li, dilation in enumerate(dilations):
        w1_ref = refs[idx]
        b1 = refs[idx + 1][...]
        w2_ref = refs[idx + 2]
        b2 = refs[idx + 3][...]
        idx += 4

        h = _causal_dilated_conv(x, w1_ref, b1, dilation=dilation,
                                 kernel_size=kernel_size, t_idx=t_idx, L=L)
        h = jnp.maximum(h, 0.0)                      # relu (dropout = identity)
        h = _causal_dilated_conv(h, w2_ref, b2, dilation=dilation,
                                 kernel_size=kernel_size, t_idx=t_idx, L=L)
        h = jnp.maximum(h, 0.0)

        if has_ds[li]:                               # 1x1-conv downsample
            wd_ref = refs[idx]
            bd = refs[idx + 1][...]
            idx += 2
            res = jnp.dot(x.astype(jnp.bfloat16), wd_ref[...],
                          preferred_element_type=jnp.float32) + bd
        else:
            res = x
        x = jnp.maximum(h + res, 0.0)

    # Time-max pool: [B*L, C] -> [B, C] as one fused reduction.
    C = x.shape[-1]
    if L % 8 == 0:                                   # sublane-aligned split
        pooled = jnp.max(x.reshape(B, L, C), axis=1)
    else:                                            # fallback for odd L
        pooled = jnp.concatenate(
            [jnp.max(x[b * L:(b + 1) * L, :], axis=0, keepdims=True)
             for b in range(B)], axis=0)
    o_ref[...] = pooled


# ----------------------------------------------------------------------------
# Forward pass: one fused pallas_call, no grid, everything VMEM-resident.
# ----------------------------------------------------------------------------
def tcn_forward(tokens, params, kernel_size=2, pool="max"):
    if pool != "max":
        # TODO(synk): 'avg'/'both'/'last' pooling modes not implemented.
        raise NotImplementedError(pool)

    B, L = tokens.shape
    layers = params["layers"]
    dilations = tuple(2 ** i for i in range(len(layers)))
    has_ds = tuple("wd" in lyr for lyr in layers)
    c_out = layers[-1]["w2"].shape[-1]

    emb = params["embedding"]
    # Pad vocab (lane axis of the one-hot / MXU contraction dim) to a multiple
    # of 128 so the one-hot matmul is lane-dense.  Padded rows are never
    # selected, so this is free correctness-wise.
    v = emb.shape[0]
    v_pad = ((v + 127) // 128) * 128
    if v_pad != v:
        emb = jnp.pad(emb, ((0, v_pad - v), (0, 0)))

    tok2d = tokens.reshape(B * L, 1).astype(jnp.int32)

    # Conv weights go in as bf16 (halves VMEM/vreg footprint, ~2x MXU rate);
    # biases stay f32, accumulation stays f32 via preferred_element_type.
    flat_params = []
    for lyr in layers:
        flat_params += [lyr["w1"].astype(jnp.bfloat16), lyr["b1"],
                        lyr["w2"].astype(jnp.bfloat16), lyr["b2"]]
        if "wd" in lyr:
            flat_params += [lyr["wd"].astype(jnp.bfloat16), lyr["bd"]]

    kernel = functools.partial(_tcn_fused_kernel, B=B, L=L,
                               kernel_size=kernel_size, dilations=dilations,
                               has_ds=has_ds)

    # TODO(synk): for large B*L, add a row-tiled grid (tiles a multiple of L,
    # 128 rows on v5e / 256 on v6e+v7x), dimension_semantics=("parallel",) for
    # v7x's two TensorCores, weight index_maps pinned to block 0, and an
    # explicit vmem_limit_bytes sized for v7x's 64 MiB VMEM.  At B*L = 32 a
    # gridless call is already fixed-overhead bound, so no grid here.
    return pl.pallas_call(
        kernel,
        out_shape=jax.ShapeDtypeStruct((B, c_out), jnp.float32),
    )(tok2d, emb, *flat_params)


# ----------------------------------------------------------------------------
# Parameter setup (deterministic, synthetic) + weight_norm reparameterization
# ----------------------------------------------------------------------------
def _weight_norm(v, g):
    # PyTorch weight_norm with dim=0: w = g * v / ||v||, norm over all dims but 0
    norm = jnp.sqrt(jnp.sum(v * v, axis=tuple(range(1, v.ndim)), keepdims=True))
    return g * v / norm


def init_params(key, input_size, num_inputs=64, num_channels=(32, 32, 32, 32),
                kernel_size=2):
    params = {}
    key, k_emb = jax.random.split(key)
    params["embedding"] = jax.random.normal(k_emb, (input_size, num_inputs),
                                            jnp.float32)
    layers = []
    for i, c_out in enumerate(num_channels):
        c_in = num_inputs if i == 0 else num_channels[i - 1]
        key, k1, k1b, k2, k2b, kd, kdb = jax.random.split(key, 7)

        def make_conv(kk, ci, co):
            # PyTorch Conv2d weight [co, ci, 1, K] ~ N(0, 0.01); weight_norm
            # with g initialized to ||v|| makes the effective weight equal v.
            v = 0.01 * jax.random.normal(kk, (co, ci, 1, kernel_size), jnp.float32)
            g = jnp.sqrt(jnp.sum(v * v, axis=(1, 2, 3), keepdims=True))
            w = _weight_norm(v, g)                   # [co, ci, 1, K]
            # Per-tap layout: (K, C_in, C_out); tap k pairs with causal shift
            # (K-1-k)*dilation in the kernel.
            return jnp.transpose(w[:, :, 0, :], (2, 1, 0))

        bound1 = 1.0 / math.sqrt(c_in * kernel_size)
        bound2 = 1.0 / math.sqrt(c_out * kernel_size)
        layer = {
            "w1": make_conv(k1, c_in, c_out),
            "b1": jax.random.uniform(k1b, (1, c_out), jnp.float32, -bound1, bound1),
            "w2": make_conv(k2, c_out, c_out),
            "b2": jax.random.uniform(k2b, (1, c_out), jnp.float32, -bound2, bound2),
        }
        if c_in != c_out:  # downsample = Conv1d(c_in, c_out, 1)
            wd = 0.01 * jax.random.normal(kd, (c_out, c_in, 1), jnp.float32)
            layer["wd"] = jnp.transpose(wd[:, :, 0], (1, 0))       # (C_in, C_out)
            bd_bound = 1.0 / math.sqrt(c_in)
            layer["bd"] = jax.random.uniform(kdb, (1, c_out), jnp.float32,
                                             -bd_bound, bd_bound)
        layers.append(layer)
    params["layers"] = layers
    return params


if __name__ == "__main__":
    key = jax.random.PRNGKey(0)
    input_size = 50      # vocab
    num_inputs = 64
    num_channels = (32, 32, 32, 32)
    kernel_size = 2
    B, L = 2, 16

    k_tok, k_par = jax.random.split(key)
    tokens = jax.random.randint(k_tok, (B, L), 0, input_size, dtype=jnp.int32)
    params = init_params(k_par, input_size, num_inputs, num_channels, kernel_size)

    out = tcn_forward(tokens, params, kernel_size=kernel_size, pool="max")
    out = jax.block_until_ready(out)
    assert out.shape == (B, num_channels[-1]), out.shape
    print("KERNEL_OK")
</pallas_src>

<mosaic_0001>
module attributes {stable_mosaic.version = 11 : i64} {
  func.func @_tcn_fused_kernel(%arg0: memref<32x1xi32, #tpu.memory_space<vmem>>, %arg1: memref<128x64xf32, #tpu.memory_space<vmem>>, %arg2: memref<2x64x32xbf16, #tpu.memory_space<vmem>>, %arg3: memref<1x32xf32, #tpu.memory_space<vmem>>, %arg4: memref<2x32x32xbf16, #tpu.memory_space<vmem>>, %arg5: memref<1x32xf32, #tpu.memory_space<vmem>>, %arg6: memref<64x32xbf16, #tpu.memory_space<vmem>>, %arg7: memref<1x32xf32, #tpu.memory_space<vmem>>, %arg8: memref<2x32x32xbf16, #tpu.memory_space<vmem>>, %arg9: memref<1x32xf32, #tpu.memory_space<vmem>>, %arg10: memref<2x32x32xbf16, #tpu.memory_space<vmem>>, %arg11: memref<1x32xf32, #tpu.memory_space<vmem>>, %arg12: memref<2x32x32xbf16, #tpu.memory_space<vmem>>, %arg13: memref<1x32xf32, #tpu.memory_space<vmem>>, %arg14: memref<2x32x32xbf16, #tpu.memory_space<vmem>>, %arg15: memref<1x32xf32, #tpu.memory_space<vmem>>, %arg16: memref<2x32x32xbf16, #tpu.memory_space<vmem>>, %arg17: memref<1x32xf32, #tpu.memory_space<vmem>>, %arg18: memref<2x32x32xbf16, #tpu.memory_space<vmem>>, %arg19: memref<1x32xf32, #tpu.memory_space<vmem>>, %arg20: memref<2x32xf32, #tpu.memory_space<vmem>>) attributes {dimension_semantics = [], scalar_prefetch = 0 : i64, scratch_operands = 0 : i64, tpu.core_type = #tpu.core_type<tc>} {
    %c0 = arith.constant 0 : index
    %c0_0 = arith.constant 0 : index
    %0 = vector.load %arg0[%c0, %c0_0] : memref<32x1xi32, #tpu.memory_space<vmem>>, vector<32x1xi32>
    %1 = tpu.iota {dimensions = array<i32: 1>} : vector<32x128xi32>
    %2 = vector.broadcast %0 : vector<32x1xi32> to vector<32x128xi32>
    %3 = arith.cmpi eq, %2, %1 : vector<32x128xi32>
    %4 = arith.extui %3 : vector<32x128xi1> to vector<32x128xi32>
    %5 = arith.sitofp %4 : vector<32x128xi32> to vector<32x128xf32>
    %c0_1 = arith.constant 0 : index
    %c0_2 = arith.constant 0 : index
    %6 = vector.load %arg1[%c0_1, %c0_2] : memref<128x64xf32, #tpu.memory_space<vmem>>, vector<128x64xf32>
    %cst = arith.constant dense<0.000000e+00> : vector<32x64xf32>
    %7 = tpu.matmul %5, %6, %cst {dimension_numbers = #tpu.dot_dimension_numbers<[1], [0], [0], [1], [0, 0, 1, 1], [], []>} : vector<32x128xf32>, vector<128x64xf32>, vector<32x64xf32> -> vector<32x64xf32>
    %8 = tpu.iota {dimensions = array<i32: 0>} : vector<32x1xi32>
    %c16_i32 = arith.constant 16 : i32
    %c0_i32 = arith.constant 0 : i32
    %9 = arith.cmpi eq, %c16_i32, %c0_i32 : i32
    %c1_i32 = arith.constant 1 : i32
    %10 = arith.select %9, %c1_i32, %c16_i32 : i32
    %11 = vector.broadcast %10 : i32 to vector<32x1xi32>
    %12 = arith.remsi %8, %11 : vector<32x1xi32>
    %c0_i32_3 = arith.constant 0 : i32
    %13 = vector.broadcast %c0_i32_3 : i32 to vector<32x1xi32>
    %14 = arith.cmpi ne, %12, %13 : vector<32x1xi32>
    %c0_i32_4 = arith.constant 0 : i32
    %15 = vector.broadcast %c0_i32_4 : i32 to vector<32x1xi32>
    %16 = arith.cmpi slt, %12, %15 : vector<32x1xi32>
    %c0_i32_5 = arith.constant 0 : i32
    %17 = arith.cmpi slt, %10, %c0_i32_5 : i32
    %18 = vector.broadcast %17 : i1 to vector<32x1xi1>
    %19 = vector.broadcast %18 : vector<32x1xi1> to vector<32x1xi1>
    %20 = arith.xori %16, %19 : vector<32x1xi1>
    %21 = arith.andi %20, %14 : vector<32x1xi1>
    %22 = vector.broadcast %10 : i32 to vector<32x1xi32>
    %23 = arith.addi %12, %22 : vector<32x1xi32>
    %24 = arith.select %21, %23, %12 : vector<32x1xi1>, vector<32x1xi32>
    %c0_6 = arith.constant 0 : index
    %c0_7 = arith.constant 0 : index
    %25 = vector.load %arg3[%c0_6, %c0_7] : memref<1x32xf32, #tpu.memory_space<vmem>>, vector<1x32xf32>
    %c0_8 = arith.constant 0 : index
    %c0_9 = arith.constant 0 : index
    %26 = vector.load %arg5[%c0_8, %c0_9] : memref<1x32xf32, #tpu.memory_space<vmem>>, vector<1x32xf32>
    %c1_i32_10 = arith.constant 1 : i32
    %27 = tpu.dynamic_rotate %7 by %c1_i32_10 dim 0 : vector<32x64xf32>, i32 -> vector<32x64xf32>
    %c1_i32_11 = arith.constant 1 : i32
    %28 = vector.broadcast %c1_i32_11 : i32 to vector<32x1xi32>
    %29 = arith.cmpi sge, %24, %28 : vector<32x1xi32>
    %cst_12 = arith.constant 0.000000e+00 : f32
    %30 = vector.shape_cast %29 : vector<32x1xi1> to vector<32x1xi1>
    %31 = vector.broadcast %30 : vector<32x1xi1> to vector<32x64xi1>
    %32 = vector.broadcast %cst_12 : f32 to vector<32x64xf32>
    %33 = arith.select %31, %27, %32 : vector<32x64xi1>, vector<32x64xf32>
    %34 = arith.truncf %33 : vector<32x64xf32> to vector<32x64xbf16>
    %c0_13 = arith.constant 0 : index
    %c0_14 = arith.constant 0 : index
    %c0_15 = arith.constant 0 : index
    %35 = vector.load %arg2[%c0_13, %c0_14, %c0_15] : memref<2x64x32xbf16, #tpu.memory_space<vmem>>, vector<1x64x32xbf16>
    %36 = vector.shape_cast %35 : vector<1x64x32xbf16> to vector<64x32xbf16>
    %cst_16 = arith.constant dense<0.000000e+00> : vector<32x32xf32>
    %37 = tpu.matmul %34, %36, %cst_16 {dimension_numbers = #tpu.dot_dimension_numbers<[1], [0], [0], [1], [0, 0, 1, 1], [], []>} : vector<32x64xbf16>, vector<64x32xbf16>, vector<32x32xf32> -> vector<32x32xf32>
    %38 = arith.truncf %7 : vector<32x64xf32> to vector<32x64xbf16>
    %c1 = arith.constant 1 : index
    %c0_17 = arith.constant 0 : index
    %c0_18 = arith.constant 0 : index
    %39 = vector.load %arg2[%c1, %c0_17, %c0_18] : memref<2x64x32xbf16, #tpu.memory_space<vmem>>, vector<1x64x32xbf16>
    %40 = vector.shape_cast %39 : vector<1x64x32xbf16> to vector<64x32xbf16>
    %cst_19 = arith.constant dense<0.000000e+00> : vector<32x32xf32>
    %41 = tpu.matmul %38, %40, %cst_19 {dimension_numbers = #tpu.dot_dimension_numbers<[1], [0], [0], [1], [0, 0, 1, 1], [], []>} : vector<32x64xbf16>, vector<64x32xbf16>, vector<32x32xf32> -> vector<32x32xf32>
    %42 = arith.addf %37, %41 : vector<32x32xf32>
    %43 = vector.broadcast %25 : vector<1x32xf32> to vector<32x32xf32>
    %44 = arith.addf %42, %43 : vector<32x32xf32>
    %cst_20 = arith.constant 0.000000e+00 : f32
    %45 = vector.broadcast %cst_20 : f32 to vector<32x32xf32>
    %46 = arith.maximumf %44, %45 : vector<32x32xf32>
    %c1_i32_21 = arith.constant 1 : i32
    %47 = tpu.dynamic_rotate %46 by %c1_i32_21 dim 0 : vector<32x32xf32>, i32 -> vector<32x32xf32>
    %c1_i32_22 = arith.constant 1 : i32
    %48 = vector.broadcast %c1_i32_22 : i32 to vector<32x1xi32>
    %49 = arith.cmpi sge, %24, %48 : vector<32x1xi32>
    %cst_23 = arith.constant 0.000000e+00 : f32
    %50 = vector.shape_cast %49 : vector<32x1xi1> to vector<32x1xi1>
    %51 = vector.broadcast %50 : vector<32x1xi1> to vector<32x32xi1>
    %52 = vector.broadcast %cst_23 : f32 to vector<32x32xf32>
    %53 = arith.select %51, %47, %52 : vector<32x32xi1>, vector<32x32xf32>
    %54 = arith.truncf %53 : vector<32x32xf32> to vector<32x32xbf16>
    %c0_24 = arith.constant 0 : index
    %c0_25 = arith.constant 0 : index
    %c0_26 = arith.constant 0 : index
    %55 = vector.load %arg4[%c0_24, %c0_25, %c0_26] : memref<2x32x32xbf16, #tpu.memory_space<vmem>>, vector<1x32x32xbf16>
    %56 = vector.shape_cast %55 : vector<1x32x32xbf16> to vector<32x32xbf16>
    %cst_27 = arith.constant dense<0.000000e+00> : vector<32x32xf32>
    %57 = tpu.matmul %54, %56, %cst_27 {dimension_numbers = #tpu.dot_dimension_numbers<[1], [0], [0], [1], [0, 0, 1, 1], [], []>} : vector<32x32xbf16>, vector<32x32xbf16>, vector<32x32xf32> -> vector<32x32xf32>
    %58 = arith.truncf %46 : vector<32x32xf32> to vector<32x32xbf16>
    %c1_28 = arith.constant 1 : index
    %c0_29 = arith.constant 0 : index
    %c0_30 = arith.constant 0 : index
    %59 = vector.load %arg4[%c1_28, %c0_29, %c0_30] : memref<2x32x32xbf16, #tpu.memory_space<vmem>>, vector<1x32x32xbf16>
    %60 = vector.shape_cast %59 : vector<1x32x32xbf16> to vector<32x32xbf16>
    %cst_31 = arith.constant dense<0.000000e+00> : vector<32x32xf32>
    %61 = tpu.matmul %58, %60, %cst_31 {dimension_numbers = #tpu.dot_dimension_numbers<[1], [0], [0], [1], [0, 0, 1, 1], [], []>} : vector<32x32xbf16>, vector<32x32xbf16>, vector<32x32xf32> -> vector<32x32xf32>
    %62 = arith.addf %57, %61 : vector<32x32xf32>
    %63 = vector.broadcast %26 : vector<1x32xf32> to vector<32x32xf32>
    %64 = arith.addf %62, %63 : vector<32x32xf32>
    %cst_32 = arith.constant 0.000000e+00 : f32
    %65 = vector.broadcast %cst_32 : f32 to vector<32x32xf32>
    %66 = arith.maximumf %64, %65 : vector<32x32xf32>
    %c0_33 = arith.constant 0 : index
    %c0_34 = arith.constant 0 : index
    %67 = vector.load %arg7[%c0_33, %c0_34] : memref<1x32xf32, #tpu.memory_space<vmem>>, vector<1x32xf32>
    %68 = arith.truncf %7 : vector<32x64xf32> to vector<32x64xbf16>
    %c0_35 = arith.constant 0 : index
    %c0_36 = arith.constant 0 : index
    %69 = vector.load %arg6[%c0_35, %c0_36] : memref<64x32xbf16, #tpu.memory_space<vmem>>, vector<64x32xbf16>
    %cst_37 = arith.constant dense<0.000000e+00> : vector<32x32xf32>
    %70 = tpu.matmul %68, %69, %cst_37 {dimension_numbers = #tpu.dot_dimension_numbers<[1], [0], [0], [1], [0, 0, 1, 1], [], []>} : vector<32x64xbf16>, vector<64x32xbf16>, vector<32x32xf32> -> vector<32x32xf32>
    %71 = vector.broadcast %67 : vector<1x32xf32> to vector<32x32xf32>
    %72 = arith.addf %70, %71 : vector<32x32xf32>
    %73 = arith.addf %66, %72 : vector<32x32xf32>
    %cst_38 = arith.constant 0.000000e+00 : f32
    %74 = vector.broadcast %cst_38 : f32 to vector<32x32xf32>
    %75 = arith.maximumf %73, %74 : vector<32x32xf32>
    %c0_39 = arith.constant 0 : index
    %c0_40 = arith.constant 0 : index
    %76 = vector.load %arg9[%c0_39, %c0_40] : memref<1x32xf32, #tpu.memory_space<vmem>>, vector<1x32xf32>
    %c0_41 = arith.constant 0 : index
    %c0_42 = arith.constant 0 : index
    %77 = vector.load %arg11[%c0_41, %c0_42] : memref<1x32xf32, #tpu.memory_space<vmem>>, vector<1x32xf32>
    %c2_i32 = arith.constant 2 : i32
    %78 = tpu.dynamic_rotate %75 by %c2_i32 dim 0 : vector<32x32xf32>, i32 -> vector<32x32xf32>
    %c2_i32_43 = arith.constant 2 : i32
    %79 = vector.broadcast %c2_i32_43 : i32 to vector<32x1xi32>
    %80 = arith.cmpi sge, %24, %79 : vector<32x1xi32>
    %cst_44 = arith.constant 0.000000e+00 : f32
    %81 = vector.shape_cast %80 : vector<32x1xi1> to vector<32x1xi1>
    %82 = vector.broadcast %81 : vector<32x1xi1> to vector<32x32xi1>
    %83 = vector.broadcast %cst_44 : f32 to vector<32x32xf32>
    %84 = arith.select %82, %78, %83 : vector<32x32xi1>, vector<32x32xf32>
    %85 = arith.truncf %84 : vector<32x32xf32> to vector<32x32xbf16>
    %c0_45 = arith.constant 0 : index
    %c0_46 = arith.constant 0 : index
    %c0_47 = arith.constant 0 : index
    %86 = vector.load %arg8[%c0_45, %c0_46, %c0_47] : memref<2x32x32xbf16, #tpu.memory_space<vmem>>, vector<1x32x32xbf16>
    %87 = vector.shape_cast %86 : vector<1x32x32xbf16> to vector<32x32xbf16>
    %cst_48 = arith.constant dense<0.000000e+00> : vector<32x32xf32>
    %88 = tpu.matmul %85, %87, %cst_48 {dimension_numbers = #tpu.dot_dimension_numbers<[1], [0], [0], [1], [0, 0, 1, 1], [], []>} : vector<32x32xbf16>, vector<32x32xbf16>, vector<32x32xf32> -> vector<32x32xf32>
    %89 = arith.truncf %75 : vector<32x32xf32> to vector<32x32xbf16>
    %c1_49 = arith.constant 1 : index
    %c0_50 = arith.constant 0 : index
    %c0_51 = arith.constant 0 : index
    %90 = vector.load %arg8[%c1_49, %c0_50, %c0_51] : memref<2x32x32xbf16, #tpu.memory_space<vmem>>, vector<1x32x32xbf16>
    %91 = vector.shape_cast %90 : vector<1x32x32xbf16> to vector<32x32xbf16>
    %cst_52 = arith.constant dense<0.000000e+00> : vector<32x32xf32>
    %92 = tpu.matmul %89, %91, %cst_52 {dimension_numbers = #tpu.dot_dimension_numbers<[1], [0], [0], [1], [0, 0, 1, 1], [], []>} : vector<32x32xbf16>, vector<32x32xbf16>, vector<32x32xf32> -> vector<32x32xf32>
    %93 = arith.addf %88, %92 : vector<32x32xf32>
    %94 = vector.broadcast %76 : vector<1x32xf32> to vector<32x32xf32>
    %95 = arith.addf %93, %94 : vector<32x32xf32>
    %cst_53 = arith.constant 0.000000e+00 : f32
    %96 = vector.broadcast %cst_53 : f32 to vector<32x32xf32>
    %97 = arith.maximumf %95, %96 : vector<32x32xf32>
    %c2_i32_54 = arith.constant 2 : i32
    %98 = tpu.dynamic_rotate %97 by %c2_i32_54 dim 0 : vector<32x32xf32>, i32 -> vector<32x32xf32>
    %c2_i32_55 = arith.constant 2 : i32
    %99 = vector.broadcast %c2_i32_55 : i32 to vector<32x1xi32>
    %100 = arith.cmpi sge, %24, %99 : vector<32x1xi32>
    %cst_56 = arith.constant 0.000000e+00 : f32
    %101 = vector.shape_cast %100 : vector<32x1xi1> to vector<32x1xi1>
    %102 = vector.broadcast %101 : vector<32x1xi1> to vector<32x32xi1>
    %103 = vector.broadcast %cst_56 : f32 to vector<32x32xf32>
    %104 = arith.select %102, %98, %103 : vector<32x32xi1>, vector<32x32xf32>
    %105 = arith.truncf %104 : vector<32x32xf32> to vector<32x32xbf16>
    %c0_57 = arith.constant 0 : index
    %c0_58 = arith.constant 0 : index
    %c0_59 = arith.constant 0 : index
    %106 = vector.load %arg10[%c0_57, %c0_58, %c0_59] : memref<2x32x32xbf16, #tpu.memory_space<vmem>>, vector<1x32x32xbf16>
    %107 = vector.shape_cast %106 : vector<1x32x32xbf16> to vector<32x32xbf16>
    %cst_60 = arith.constant dense<0.000000e+00> : vector<32x32xf32>
    %108 = tpu.matmul %105, %107, %cst_60 {dimension_numbers = #tpu.dot_dimension_numbers<[1], [0], [0], [1], [0, 0, 1, 1], [], []>} : vector<32x32xbf16>, vector<32x32xbf16>, vector<32x32xf32> -> vector<32x32xf32>
    %109 = arith.truncf %97 : vector<32x32xf32> to vector<32x32xbf16>
    %c1_61 = arith.constant 1 : index
    %c0_62 = arith.constant 0 : index
    %c0_63 = arith.constant 0 : index
    %110 = vector.load %arg10[%c1_61, %c0_62, %c0_63] : memref<2x32x32xbf16, #tpu.memory_space<vmem>>, vector<1x32x32xbf16>
    %111 = vector.shape_cast %110 : vector<1x32x32xbf16> to vector<32x32xbf16>
    %cst_64 = arith.constant dense<0.000000e+00> : vector<32x32xf32>
    %112 = tpu.matmul %109, %111, %cst_64 {dimension_numbers = #tpu.dot_dimension_numbers<[1], [0], [0], [1], [0, 0, 1, 1], [], []>} : vector<32x32xbf16>, vector<32x32xbf16>, vector<32x32xf32> -> vector<32x32xf32>
    %113 = arith.addf %108, %112 : vector<32x32xf32>
    %114 = vector.broadcast %77 : vector<1x32xf32> to vector<32x32xf32>
    %115 = arith.addf %113, %114 : vector<32x32xf32>
    %cst_65 = arith.constant 0.000000e+00 : f32
    %116 = vector.broadcast %cst_65 : f32 to vector<32x32xf32>
    %117 = arith.maximumf %115, %116 : vector<32x32xf32>
    %118 = arith.addf %117, %75 : vector<32x32xf32>
    %cst_66 = arith.constant 0.000000e+00 : f32
    %119 = vector.broadcast %cst_66 : f32 to vector<32x32xf32>
    %120 = arith.maximumf %118, %119 : vector<32x32xf32>
    %c0_67 = arith.constant 0 : index
    %c0_68 = arith.constant 0 : index
    %121 = vector.load %arg13[%c0_67, %c0_68] : memref<1x32xf32, #tpu.memory_space<vmem>>, vector<1x32xf32>
    %c0_69 = arith.constant 0 : index
    %c0_70 = arith.constant 0 : index
    %122 = vector.load %arg15[%c0_69, %c0_70] : memref<1x32xf32, #tpu.memory_space<vmem>>, vector<1x32xf32>
    %c4_i32 = arith.constant 4 : i32
    %123 = tpu.dynamic_rotate %120 by %c4_i32 dim 0 : vector<32x32xf32>, i32 -> vector<32x32xf32>
    %c4_i32_71 = arith.constant 4 : i32
    %124 = vector.broadcast %c4_i32_71 : i32 to vector<32x1xi32>
    %125 = arith.cmpi sge, %24, %124 : vector<32x1xi32>
    %cst_72 = arith.constant 0.000000e+00 : f32
    %126 = vector.shape_cast %125 : vector<32x1xi1> to vector<32x1xi1>
    %127 = vector.broadcast %126 : vector<32x1xi1> to vector<32x32xi1>
    %128 = vector.broadcast %cst_72 : f32 to vector<32x32xf32>
    %129 = arith.select %127, %123, %128 : vector<32x32xi1>, vector<32x32xf32>
    %130 = arith.truncf %129 : vector<32x32xf32> to vector<32x32xbf16>
    %c0_73 = arith.constant 0 : index
    %c0_74 = arith.constant 0 : index
    %c0_75 = arith.constant 0 : index
    %131 = vector.load %arg12[%c0_73, %c0_74, %c0_75] : memref<2x32x32xbf16, #tpu.memory_space<vmem>>, vector<1x32x32xbf16>
    %132 = vector.shape_cast %131 : vector<1x32x32xbf16> to vector<32x32xbf16>
    %cst_76 = arith.constant dense<0.000000e+00> : vector<32x32xf32>
    %133 = tpu.matmul %130, %132, %cst_76 {dimension_numbers = #tpu.dot_dimension_numbers<[1], [0], [0], [1], [0, 0, 1, 1], [], []>} : vector<32x32xbf16>, vector<32x32xbf16>, vector<32x32xf32> -> vector<32x32xf32>
    %134 = arith.truncf %120 : vector<32x32xf32> to vector<32x32xbf16>
    %c1_77 = arith.constant 1 : index
    %c0_78 = arith.constant 0 : index
    %c0_79 = arith.constant 0 : index
    %135 = vector.load %arg12[%c1_77, %c0_78, %c0_79] : memref<2x32x32xbf16, #tpu.memory_space<vmem>>, vector<1x32x32xbf16>
    %136 = vector.shape_cast %135 : vector<1x32x32xbf16> to vector<32x32xbf16>
    %cst_80 = arith.constant dense<0.000000e+00> : vector<32x32xf32>
    %137 = tpu.matmul %134, %136, %cst_80 {dimension_numbers = #tpu.dot_dimension_numbers<[1], [0], [0], [1], [0, 0, 1, 1], [], []>} : vector<32x32xbf16>, vector<32x32xbf16>, vector<32x32xf32> -> vector<32x32xf32>
    %138 = arith.addf %133, %137 : vector<32x32xf32>
    %139 = vector.broadcast %121 : vector<1x32xf32> to vector<32x32xf32>
    %140 = arith.addf %138, %139 : vector<32x32xf32>
    %cst_81 = arith.constant 0.000000e+00 : f32
    %141 = vector.broadcast %cst_81 : f32 to vector<32x32xf32>
    %142 = arith.maximumf %140, %141 : vector<32x32xf32>
    %c4_i32_82 = arith.constant 4 : i32
    %143 = tpu.dynamic_rotate %142 by %c4_i32_82 dim 0 : vector<32x32xf32>, i32 -> vector<32x32xf32>
    %c4_i32_83 = arith.constant 4 : i32
    %144 = vector.broadcast %c4_i32_83 : i32 to vector<32x1xi32>
    %145 = arith.cmpi sge, %24, %144 : vector<32x1xi32>
    %cst_84 = arith.constant 0.000000e+00 : f32
    %146 = vector.shape_cast %145 : vector<32x1xi1> to vector<32x1xi1>
    %147 = vector.broadcast %146 : vector<32x1xi1> to vector<32x32xi1>
    %148 = vector.broadcast %cst_84 : f32 to vector<32x32xf32>
    %149 = arith.select %147, %143, %148 : vector<32x32xi1>, vector<32x32xf32>
    %150 = arith.truncf %149 : vector<32x32xf32> to vector<32x32xbf16>
    %c0_85 = arith.constant 0 : index
    %c0_86 = arith.constant 0 : index
    %c0_87 = arith.constant 0 : index
    %151 = vector.load %arg14[%c0_85, %c0_86, %c0_87] : memref<2x32x32xbf16, #tpu.memory_space<vmem>>, vector<1x32x32xbf16>
    %152 = vector.shape_cast %151 : vector<1x32x32xbf16> to vector<32x32xbf16>
    %cst_88 = arith.constant dense<0.000000e+00> : vector<32x32xf32>
    %153 = tpu.matmul %150, %152, %cst_88 {dimension_numbers = #tpu.dot_dimension_numbers<[1], [0], [0], [1], [0, 0, 1, 1], [], []>} : vector<32x32xbf16>, vector<32x32xbf16>, vector<32x32xf32> -> vector<32x32xf32>
    %154 = arith.truncf %142 : vector<32x32xf32> to vector<32x32xbf16>
    %c1_89 = arith.constant 1 : index
    %c0_90 = arith.constant 0 : index
    %c0_91 = arith.constant 0 : index
    %155 = vector.load %arg14[%c1_89, %c0_90, %c0_91] : memref<2x32x32xbf16, #tpu.memory_space<vmem>>, vector<1x32x32xbf16>
    %156 = vector.shape_cast %155 : vector<1x32x32xbf16> to vector<32x32xbf16>
    %cst_92 = arith.constant dense<0.000000e+00> : vector<32x32xf32>
    %157 = tpu.matmul %154, %156, %cst_92 {dimension_numbers = #tpu.dot_dimension_numbers<[1], [0], [0], [1], [0, 0, 1, 1], [], []>} : vector<32x32xbf16>, vector<32x32xbf16>, vector<32x32xf32> -> vector<32x32xf32>
    %158 = arith.addf %153, %157 : vector<32x32xf32>
    %159 = vector.broadcast %122 : vector<1x32xf32> to vector<32x32xf32>
    %160 = arith.addf %158, %159 : vector<32x32xf32>
    %cst_93 = arith.constant 0.000000e+00 : f32
    %161 = vector.broadcast %cst_93 : f32 to vector<32x32xf32>
    %162 = arith.maximumf %160, %161 : vector<32x32xf32>
    %163 = arith.addf %162, %120 : vector<32x32xf32>
    %cst_94 = arith.constant 0.000000e+00 : f32
    %164 = vector.broadcast %cst_94 : f32 to vector<32x32xf32>
    %165 = arith.maximumf %163, %164 : vector<32x32xf32>
    %c0_95 = arith.constant 0 : index
    %c0_96 = arith.constant 0 : index
    %166 = vector.load %arg17[%c0_95, %c0_96] : memref<1x32xf32, #tpu.memory_space<vmem>>, vector<1x32xf32>
    %c0_97 = arith.constant 0 : index
    %c0_98 = arith.constant 0 : index
    %167 = vector.load %arg19[%c0_97, %c0_98] : memref<1x32xf32, #tpu.memory_space<vmem>>, vector<1x32xf32>
    %c8_i32 = arith.constant 8 : i32
    %168 = tpu.dynamic_rotate %165 by %c8_i32 dim 0 : vector<32x32xf32>, i32 -> vector<32x32xf32>
    %c8_i32_99 = arith.constant 8 : i32
    %169 = vector.broadcast %c8_i32_99 : i32 to vector<32x1xi32>
    %170 = arith.cmpi sge, %24, %169 : vector<32x1xi32>
    %cst_100 = arith.constant 0.000000e+00 : f32
    %171 = vector.shape_cast %170 : vector<32x1xi1> to vector<32x1xi1>
    %172 = vector.broadcast %171 : vector<32x1xi1> to vector<32x32xi1>
    %173 = vector.broadcast %cst_100 : f32 to vector<32x32xf32>
    %174 = arith.select %172, %168, %173 : vector<32x32xi1>, vector<32x32xf32>
    %175 = arith.truncf %174 : vector<32x32xf32> to vector<32x32xbf16>
    %c0_101 = arith.constant 0 : index
    %c0_102 = arith.constant 0 : index
    %c0_103 = arith.constant 0 : index
    %176 = vector.load %arg16[%c0_101, %c0_102, %c0_103] : memref<2x32x32xbf16, #tpu.memory_space<vmem>>, vector<1x32x32xbf16>
    %177 = vector.shape_cast %176 : vector<1x32x32xbf16> to vector<32x32xbf16>
    %cst_104 = arith.constant dense<0.000000e+00> : vector<32x32xf32>
    %178 = tpu.matmul %175, %177, %cst_104 {dimension_numbers = #tpu.dot_dimension_numbers<[1], [0], [0], [1], [0, 0, 1, 1], [], []>} : vector<32x32xbf16>, vector<32x32xbf16>, vector<32x32xf32> -> vector<32x32xf32>
    %179 = arith.truncf %165 : vector<32x32xf32> to vector<32x32xbf16>
    %c1_105 = arith.constant 1 : index
    %c0_106 = arith.constant 0 : index
    %c0_107 = arith.constant 0 : index
    %180 = vector.load %arg16[%c1_105, %c0_106, %c0_107] : memref<2x32x32xbf16, #tpu.memory_space<vmem>>, vector<1x32x32xbf16>
    %181 = vector.shape_cast %180 : vector<1x32x32xbf16> to vector<32x32xbf16>
    %cst_108 = arith.constant dense<0.000000e+00> : vector<32x32xf32>
    %182 = tpu.matmul %179, %181, %cst_108 {dimension_numbers = #tpu.dot_dimension_numbers<[1], [0], [0], [1], [0, 0, 1, 1], [], []>} : vector<32x32xbf16>, vector<32x32xbf16>, vector<32x32xf32> -> vector<32x32xf32>
    %183 = arith.addf %178, %182 : vector<32x32xf32>
    %184 = vector.broadcast %166 : vector<1x32xf32> to vector<32x32xf32>
    %185 = arith.addf %183, %184 : vector<32x32xf32>
    %cst_109 = arith.constant 0.000000e+00 : f32
    %186 = vector.broadcast %cst_109 : f32 to vector<32x32xf32>
    %187 = arith.maximumf %185, %186 : vector<32x32xf32>
    %c8_i32_110 = arith.constant 8 : i32
    %188 = tpu.dynamic_rotate %187 by %c8_i32_110 dim 0 : vector<32x32xf32>, i32 -> vector<32x32xf32>
    %c8_i32_111 = arith.constant 8 : i32
    %189 = vector.broadcast %c8_i32_111 : i32 to vector<32x1xi32>
    %190 = arith.cmpi sge, %24, %189 : vector<32x1xi32>
    %cst_112 = arith.constant 0.000000e+00 : f32
    %191 = vector.shape_cast %190 : vector<32x1xi1> to vector<32x1xi1>
    %192 = vector.broadcast %191 : vector<32x1xi1> to vector<32x32xi1>
    %193 = vector.broadcast %cst_112 : f32 to vector<32x32xf32>
    %194 = arith.select %192, %188, %193 : vector<32x32xi1>, vector<32x32xf32>
    %195 = arith.truncf %194 : vector<32x32xf32> to vector<32x32xbf16>
    %c0_113 = arith.constant 0 : index
    %c0_114 = arith.constant 0 : index
    %c0_115 = arith.constant 0 : index
    %196 = vector.load %arg18[%c0_113, %c0_114, %c0_115] : memref<2x32x32xbf16, #tpu.memory_space<vmem>>, vector<1x32x32xbf16>
    %197 = vector.shape_cast %196 : vector<1x32x32xbf16> to vector<32x32xbf16>
    %cst_116 = arith.constant dense<0.000000e+00> : vector<32x32xf32>
    %198 = tpu.matmul %195, %197, %cst_116 {dimension_numbers = #tpu.dot_dimension_numbers<[1], [0], [0], [1], [0, 0, 1, 1], [], []>} : vector<32x32xbf16>, vector<32x32xbf16>, vector<32x32xf32> -> vector<32x32xf32>
    %199 = arith.truncf %187 : vector<32x32xf32> to vector<32x32xbf16>
    %c1_117 = arith.constant 1 : index
    %c0_118 = arith.constant 0 : index
    %c0_119 = arith.constant 0 : index
    %200 = vector.load %arg18[%c1_117, %c0_118, %c0_119] : memref<2x32x32xbf16, #tpu.memory_space<vmem>>, vector<1x32x32xbf16>
    %201 = vector.shape_cast %200 : vector<1x32x32xbf16> to vector<32x32xbf16>
    %cst_120 = arith.constant dense<0.000000e+00> : vector<32x32xf32>
    %202 = tpu.matmul %199, %201, %cst_120 {dimension_numbers = #tpu.dot_dimension_numbers<[1], [0], [0], [1], [0, 0, 1, 1], [], []>} : vector<32x32xbf16>, vector<32x32xbf16>, vector<32x32xf32> -> vector<32x32xf32>
    %203 = arith.addf %198, %202 : vector<32x32xf32>
    %204 = vector.broadcast %167 : vector<1x32xf32> to vector<32x32xf32>
    %205 = arith.addf %203, %204 : vector<32x32xf32>
    %cst_121 = arith.constant 0.000000e+00 : f32
    %206 = vector.broadcast %cst_121 : f32 to vector<32x32xf32>
    %207 = arith.maximumf %205, %206 : vector<32x32xf32>
    %208 = arith.addf %207, %165 : vector<32x32xf32>
    %cst_122 = arith.constant 0.000000e+00 : f32
    %209 = vector.broadcast %cst_122 : f32 to vector<32x32xf32>
    %210 = arith.maximumf %208, %209 : vector<32x32xf32>
    %211 = vector.shape_cast %210 : vector<32x32xf32> to vector<2x16x32xf32>
    %cst_123 = arith.constant dense<0xFF800000> : vector<2x32xf32>
    %212 = vector.multi_reduction <maximumf>, %211, %cst_123 [1] : vector<2x16x32xf32> to vector<2x32xf32>
    %c0_124 = arith.constant 0 : index
    %c0_125 = arith.constant 0 : index
    %213 = vector.load %arg20[%c0_124, %c0_125] : memref<2x32xf32, #tpu.memory_space<vmem>>, vector<2x32xf32>
    tpu.vector_store %arg20[%c0_124, %c0_125], %212 {strides = array<i32>} : memref<2x32xf32, #tpu.memory_space<vmem>>, vector<2x32xf32>,
    return
  }
}

</mosaic_0001>

<bundles_post_ra>
// kernel: tpu_custom_call.1
= control target key start
LH: loop header
LB: loop body
LE: loop exit
PB: predicated region body
PF: predicated region fallthrough
CT: control target
= control target key end

     0   :  { %s2113_s0 = inlined_call_operand.vmem [shape: s32[32,1], index: 0, kind: input, shape index: {}]   ;;  %s2114_s1 = inlined_call_operand.vmem [shape: f32[128,64], index: 1, kind: input, shape index: {}]   ;;  %s2115_s2 = inlined_call_operand.vmem [shape: bf16[2,64,32], index: 2, kind: input, shape index: {}]   ;;  %s2116_s3 = inlined_call_operand.vmem [shape: f32[1,32], index: 3, kind: input, shape index: {}]   ;;  %s2117_s4 = inlined_call_operand.vmem [shape: bf16[2,32,32], index: 4, kind: input, shape index: {}]   ;;  %s2118_s5 = inlined_call_operand.vmem [shape: f32[1,32], index: 5, kind: input, shape index: {}]   ;;  %s2119_s6 = inlined_call_operand.vmem [shape: bf16[64,32], index: 6, kind: input, shape index: {}]   ;;  %s2120_s7 = inlined_call_operand.vmem [shape: f32[1,32], index: 7, kind: input, shape index: {}]   ;;  %s2121_s8 = inlined_call_operand.vmem [shape: bf16[2,32,32], index: 8, kind: input, shape index: {}]   ;;  %s2122_s9 = inlined_call_operand.vmem [shape: f32[1,32], index: 9, kind: input, shape index: {}]   ;;  %s2123_s10 = inlined_call_operand.vmem [shape: bf16[2,32,32], index: 10, kind: input, shape index: {}]   ;;  %s2124_s11 = inlined_call_operand.vmem [shape: f32[1,32], index: 11, kind: input, shape index: {}]   ;;  %s2125_s12 = inlined_call_operand.vmem [shape: bf16[2,32,32], index: 12, kind: input, shape index: {}]   ;;  %s2126_s13 = inlined_call_operand.vmem [shape: f32[1,32], index: 13, kind: input, shape index: {}]   ;;  %s2127_s14 = inlined_call_operand.vmem [shape: bf16[2,32,32], index: 14, kind: input, shape index: {}]   ;;  %s2128_s15 = inlined_call_operand.vmem [shape: f32[1,32], index: 15, kind: input, shape index: {}]   ;;  %s2129_s16 = inlined_call_operand.vmem [shape: bf16[2,32,32], index: 16, kind: input, shape index: {}]   ;;  %s2130_s17 = inlined_call_operand.vmem [shape: f32[1,32], index: 17, kind: input, shape index: {}]   ;;  %s2131_s18 = inlined_call_operand.vmem [shape: bf16[2,32,32], index: 18, kind: input, shape index: {}]   ;;  %s2132_s19 = inlined_call_operand.vmem [shape: f32[1,32], index: 19, kind: input, shape index: {}]   ;;  %s2133_s20 = inlined_call_operand.hbm [shape: f32[2,32], index: 20, kind: output, shape index: {}]  }
   0x1   :  { %2138 = sst [smem:[#allocation5_spill]] %s2113_s0 }
   0x2   :  { %2139 = sst [smem:[#allocation6_spill]] %s2114_s1 }
   0x3   :  { %2140 = sst [smem:[#allocation7_spill]] %s2115_s2 }
   0x4   :  { %2141 = sst [smem:[#allocation8_spill]] %s2116_s3 }
   0x5   :  { %2142 = sst [smem:[#allocation9_spill]] %s2117_s4 }
   0x6   :  { %s2143_s23 = sld [smem:[#allocation5_spill]]  ;;  %v1603_v2 = vmov 0  }
   0x7   :  { %1566 = vset.pattern.permute.xlu0 %v1603_v2  ;;  %1567 = vset.pattern.permute.xlu1 %v1603_v2  ;;  %s2144_s26 = sld [smem:[#allocation6_spill]] }
   0xc   :  { %v67_v0 = vld [vmem:[%s2143_s23] sm:$0xff]  ;;  %v69_v1 = vld [vmem:[%s2143_s23 + $0x10] sm:$0xff]  ;;  %v68_v6 = vld [vmem:[%s2143_s23 + $0x8] sm:$0xff] }
   0xd   :  { %v112_v3 = vld [vmem:[%s2144_s26 + $0x78] sm:$0xff]  ;;  %74 = vperm.xlu0 %1566, %v67_v0   ;;  %80 = vperm.xlu1 %1567, %v69_v1   ;;  %v111_v4 = vld [vmem:[%s2144_s26 + $0x70] sm:$0xff]  ;;  %v110_v5 = vld [vmem:[%s2144_s26 + $0x68] sm:$0xff] }
   0xe   :  { %113 = vmatpush.msra.mxu0 %v112_v3  ;;  %v70_v7 = vld [vmem:[%s2143_s23 + $0x18] sm:$0xff]  ;;  %v109_v8 = vld [vmem:[%s2144_s26 + $0x60] sm:$0xff] }
   0xf   :  { %v108_v9 = vld [vmem:[%s2144_s26 + $0x58] sm:$0xff] }
  0x10   :  { %114 = vmatpush.msra.mxu0 %v111_v4 }
  0x12   :  { %115 = vmatpush.msra.mxu0 %v110_v5 }
  0x14   :  { %116 = vmatpush.msra.mxu0 %v109_v8 }
  0x15   :  { %25 = vsyncpa [#allocation3], 0  ;;  %77 = vperm.xlu0 %1566, %v68_v6   ;;  %83 = vperm.xlu1 %1567, %v70_v7   ;;  %v107_v10 = vld [vmem:[%s2144_s26 + $0x50] sm:$0xff]  ;;  %v106_v11 = vld [vmem:[%s2144_s26 + $0x48] sm:$0xff]  ;;  %v71_v21 = vlaneseq  ;;  %s2145_s22 = sld [smem:[#allocation7_spill]]  ;;  %v1604_v25 = vmov 1.0  }
  0x16   :  { %117 = vmatpush.msra.mxu0 %v108_v9  ;;  %v105_v12 = vld [vmem:[%s2144_s26 + $0x40] sm:$0xff]  ;;  %v104_v13 = vld [vmem:[%s2144_s26 + $0x38] sm:$0xff]  ;;  %v103_v14 = vld [vmem:[%s2144_s26 + $0x30] sm:$0xff]  ;;  %vm267_vm4 = vcmask 523264   ;;  %s2146_s4 = sld [smem:[#allocation9_spill]]  ;;  %vm390_vm8 = vcmask 261120  }
  0x17   :  { %v102_v15 = vld [vmem:[%s2144_s26 + $0x28] sm:$0xff]  ;;  %v101_v16 = vld [vmem:[%s2144_s26 + $0x20] sm:$0xff]  ;;  %v100_v17 = vld [vmem:[%s2144_s26 + $0x18] sm:$0xff]  ;;  %v72_v23 = vand.u32 127, %v71_v21  ;;  %v1811_v46 = vshrl.u32 %v71_v21, 7  ;;  %s2147_s25 = sld [smem:[#allocation8_spill]] }
  0x18   :  { %118 = vmatpush.msra.mxu0 %v107_v10  ;;  %v99_v18 = vld [vmem:[%s2144_s26 + $0x10] sm:$0xff]  ;;  %v98_v19 = vld [vmem:[%s2144_s26 + $0x8] sm:$0xff]  ;;  %v97_v20 = vld [vmem:[%s2144_s26] sm:$0xff]  ;;  %s1271_s26 = sshll.u32 %s2133_s20, 4  ;;  %vm1259_vm15 = vcmask 1041409   ;;  %s1272_s26 = int_to_ptr.hbm [resolvable:$true] %s1271_s26 }
  0x19   :  { %v1533_v32 = vld [vmem:[%s2119_s6 + $0x18] sm:$0xff]  ;;  %v1532_v33 = vld [vmem:[%s2119_s6 + $0x10] sm:$0xff]  ;;  %v1531_v34 = vld [vmem:[%s2119_s6 + $0x8] sm:$0xff]  ;;  %v1814_v47 = vand.u32 15, %v1811_v46  ;;  %vm201_vm5 = vcmp.lt.s32.totalorder %v1811_v46, 1  ;;  %v145_v55 = vadd.s32 16, %v1811_v46 }
  0x1a   :  { %119 = vmatpush.msra.mxu0 %v106_v11  ;;  %v1530_v35 = vld [vmem:[%s2119_s6] sm:$0xff]  ;;  %vm533_vm9 = vcmp.lt.s32.totalorder %v1811_v46, 2  ;;  %vm776_vm12 = vcmp.lt.s32.totalorder %v1811_v46, 4 }
  0x1b   :  { %v1525_v22 = vld [vmem:[%s2145_s22 + $0x38] sm:$0xff]  ;;  %v1524_v29 = vld [vmem:[%s2145_s22 + $0x30] sm:$0xff]  ;;  %v1523_v30 = vld [vmem:[%s2145_s22 + $0x28] sm:$0xff]  ;;  %vm206_vm6 = vcmp.ge.s32.totalorder %v1814_v47, 1  ;;  %v1827_v57 = vand.u32 15, %v145_v55  ;;  %vm538_vm10 = vcmp.ge.s32.totalorder %v1814_v47, 2 }
  0x1c   :  { %120 = vmatpush.msra.mxu0 %v105_v12  ;;  %278 = vmatpush.bf16.msra.mxu1 %v1525_v22  ;;  %v1522_v31 = vld [vmem:[%s2145_s22 + $0x20] sm:$0xff]  ;;  %v1521_v36 = vld [vmem:[%s2145_s22 + $0x18] sm:$0xff]  ;;  %v1520_v37 = vld [vmem:[%s2145_s22 + $0x10] sm:$0xff]  ;;  %vm781_vm13 = vcmp.ge.s32.totalorder %v1814_v47, 4 }
  0x1d   :  { %1558 = vmatpush.bf16.msra.mxu2 %v1525_v22  ;;  %v1519_v39 = vld [vmem:[%s2145_s22 + $0x8] sm:$0xff]  ;;  %v1518_v40 = vld [vmem:[%s2145_s22] sm:$0xff]  ;;  %vm208_vm7 = vcmp.ge.s32.totalorder %v1827_v57, 1  ;;  %v1529_v62 = vld [vmem:[%s2146_s4 + $0x18] sm:$0xff]  ;;  %vm540_vm11 = vcmp.ge.s32.totalorder %v1827_v57, 2  ;;  %vm783_vm14 = vcmp.ge.s32.totalorder %v1827_v57, 4 }
  0x1e   :  { %121 = vmatpush.msra.mxu0 %v104_v13  ;;  %403 = vmatpush.bf16.msra.mxu3 %v1529_v62  ;;  %v1528_v63 = vld [vmem:[%s2146_s4 + $0x10] sm:$0xff]  ;;  %v1527_v1 = vld [vmem:[%s2146_s4 + $0x8] sm:$0xff]  ;;  %v1526_v5 = vld [vmem:[%s2146_s4] sm:$0xff] }
  0x1f   :  { %v1569_v7 = vld [vmem:[%s2147_s25] ss:$0 sm:$0xff]  ;;  %v1553_v47 = vld [vmem:[%s2129_s16 + $0x18] sm:$0xff]  ;;  %v1552_v57 = vld [vmem:[%s2129_s16 + $0x10] sm:$0xff] }
  0x20   :  { %122 = vmatpush.msra.mxu0 %v103_v14  ;;  %279 = vmatpush.bf16.msra.mxu1 %v1524_v29  ;;  %v1550_v46 = vld [vmem:[%s2129_s16] sm:$0xff] }
  0x21   :  { %1559 = vmatpush.bf16.msra.mxu2 %v1524_v29 }
  0x22   :  { %123 = vmatpush.msra.mxu0 %v102_v15  ;;  %404 = vmatpush.bf16.msra.mxu3 %v1528_v63 }
  0x24   :  { %124 = vmatpush.msra.mxu0 %v101_v16  ;;  %280 = vmatpush.bf16.msra.mxu1 %v1523_v30 }
  0x25   :  { %1560 = vmatpush.bf16.msra.mxu2 %v1523_v30 }
  0x26   :  { %125 = vmatpush.msra.mxu0 %v100_v17  ;;  %440 = vmatpush.bf16.msrb.mxu3 %v1527_v1 }
  0x28   :  { %126 = vmatpush.msra.mxu0 %v99_v18  ;;  %281 = vmatpush.bf16.msra.mxu1 %v1522_v31 }
  0x29   :  { %1561 = vmatpush.bf16.msra.mxu2 %v1522_v31 }
  0x2a   :  { %127 = vmatpush.msra.mxu0 %v98_v19  ;;  %441 = vmatpush.bf16.msrb.mxu3 %v1526_v5 }
  0x2c   :  { %128 = vmatpush.msra.mxu0 %v97_v20  ;;  %504 = vmatpush.bf16.msrb.mxu1 %v1533_v32 }
  0x2d   :  { %327 = vmatpush.bf16.msrb.mxu2 %v1521_v36 }
  0x30   :  { %505 = vmatpush.bf16.msrb.mxu1 %v1532_v33 }
  0x31   :  { %328 = vmatpush.bf16.msrb.mxu2 %v1520_v37 }
  0x34   :  { %506 = vmatpush.bf16.msrb.mxu1 %v1531_v34 }
  0x35   :  { %329 = vmatpush.bf16.msrb.mxu2 %v1519_v39  ;;  %v1537_v39 = vld [vmem:[%s2121_s8 + $0x18] sm:$0xff] }
  0x38   :  { %507 = vmatpush.bf16.msrb.mxu1 %v1530_v35 }
  0x39   :  { %330 = vmatpush.bf16.msrb.mxu2 %v1518_v40 }
  0x7f   :  { %v75_v24 = vpop.permute.xlu0 %74  ;;  %v81_v27 = vpop.permute.xlu1 %80 }
  0x80   :  { %vm85_vm0 = vcmp.eq.s32.totalorder %v75_v24, %v72_v23  ;;  %vm87_vm2 = vcmp.eq.s32.totalorder %v81_v27, %v72_v23 }
  0x81   :  { %1284 = vmatmul.msk.f32.vlgmr.msra.gmra.mxu0 %vm85_vm0, %v1604_v25  ;;  %vm1262_vm0 = vcmask 254976  }
  0x87   :  { %v78_v26 = vpop.permute.xlu0 %77  ;;  %v84_v28 = vpop.permute.xlu1 %83 }
  0x88   :  { %vm86_vm1 = vcmp.eq.s32.totalorder %v78_v26, %v72_v23  ;;  %vm88_vm3 = vcmp.eq.s32.totalorder %v84_v28, %v72_v23 }
  0x89   :  { %1285 = vmatmul.msk.f32.gmra.mxu0 %vm86_vm1, %v1604_v25 }
  0x91   :  { %1286 = vmatmul.msk.f32.gmra.mxu0 %vm87_vm2, %v1604_v25 }
  0x99   :  { %1287 = vmatmul.msk.f32.gmra.mxu0 %vm88_vm3, %v1604_v25 }
  0xfe   :  { %v130_v38 = vpop.f32.mrf.mxu0 }
  0xff   :  { %v197_v49 = vrot.slane %v130_v38, 7 }
 0x106   :  { %v133_v41 = vpop.f32.mrf.mxu0 }
 0x107   :  { %v232_v42 = vpack.c.bf16 %v133_v41, %v130_v38  ;;  %v198_v51 = vrot.slane %v133_v41, 7  ;;  %v1536_v41 = vld [vmem:[%s2121_s8 + $0x10] sm:$0xff] }
 0x109   :  { %1312 = vmatmul.msk.bf16.vlgmr.msra.gmra.mxu1 %vm267_vm4, %v232_v42  ;;  %v204_v53 = vsel %vm201_vm5, %v197_v49, %v198_v51 }
 0x10e   :  { %v136_v43 = vpop.f32.mrf.mxu0 }
 0x10f   :  { %v199_v56 = vrot.slane %v136_v43, 7 }
 0x111   :  { %v203_v58 = vsel %vm201_vm5, %v198_v51, %v199_v56 }
 0x112   :  { %v220_v60 = vsel %vm208_vm7, %v203_v58, 0.0 }
 0x116   :  { %v139_v44 = vpop.f32.mrf.mxu0 }
 0x117   :  { %v233_v45 = vpack.c.bf16 %v139_v44, %v136_v43  ;;  %v200_v48 = vrot.slane %v139_v44, 7 }
 0x119   :  { %1313 = vmatmul.msk.bf16.vlgmr.msra.gmra.mxu2 %vm267_vm4, %v233_v45  ;;  %1372 = vmatmul.msk.bf16.vlgmr.msrb.gmra.mxu1 %vm267_vm4, %v232_v42  ;;  %v205_v50 = vsel %vm201_vm5, %v200_v48, %v197_v49  ;;  %v202_v59 = vsel %vm201_vm5, %v199_v56, %v200_v48  ;;  %v1535_v42 = vld [vmem:[%s2121_s8 + $0x8] sm:$0xff]  ;;  %v1570_v49 = vld [vmem:[%s2118_s5] ss:$0 sm:$0xff] }
 0x11a   :  { %v218_v52 = vsel %vm206_vm6, %v205_v50, 0.0  ;;  %v223_v61 = vpack.c.bf16 %v202_v59, %v220_v60  ;;  %591 = vmatpush.bf16.msra.mxu2 %v1537_v39  ;;  %628 = vmatpush.bf16.msrb.mxu0 %v1535_v42  ;;  %v1534_v50 = vld [vmem:[%s2121_s8] sm:$0xff] }
 0x11b   :  { %v222_v54 = vpack.c.bf16 %v204_v53, %v218_v52  ;;  %v1568_v53 = vld [vmem:[%s2120_s7] ss:$0 sm:$0xff] }
 0x11e   :  { %592 = vmatpush.bf16.msra.mxu2 %v1536_v41  ;;  %629 = vmatpush.bf16.msrb.mxu0 %v1534_v50 }
 0x129   :  { %1330 = vmatmul.msk.bf16.vlgmr.msrb.gmra.mxu2 %vm267_vm4, %v222_v54  ;;  %1373 = vmatmul.msk.bf16.gmra.mxu1 %vm267_vm4, %v233_v45 }
 0x139   :  { %1331 = vmatmul.msk.bf16.gmra.mxu2 %vm267_vm4, %v223_v61 }
 0x186   :  { %v283_v3 = vpop.f32.mrf.mxu1 }
 0x18e   :  { %v285_v8 = vpop.f32.mrf.mxu1 }
 0x196   :  { %v509_v44 = vpop.f32.mrf.mxu1 }
 0x197   :  { %v510_v58 = vadd.f32 %v1568_v53, %v509_v44 }
 0x19c   :  { %v288_v0 = vpop.f32.mrf.mxu2 }
 0x19e   :  { %v511_v52 = vpop.f32.mrf.mxu1 }
 0x19f   :  { %v512_v60 = vadd.f32 %v1568_v53, %v511_v52 }
 0x1a4   :  { %v290_v2 = vpop.f32.mrf.mxu2 }
 0x1ac   :  { %v332_v4 = vpop.f32.mrf.mxu2 }
 0x1ad   :  { %v333_v6 = vadd.f32 %v332_v4, %v283_v3 }
 0x1af   :  { %v345_v10 = vadd.f32 %v1569_v7, %v333_v6 }
 0x1b1   :  { %v349_v13 = vmax.f32 %v345_v10, 0.0 }
 0x1b3   :  { %v353_v26 = vrot.slane %v349_v13, 7 }
 0x1b4   :  { %v334_v9 = vpop.f32.mrf.mxu2 }
 0x1b5   :  { %v335_v11 = vadd.f32 %v334_v9, %v285_v8 }
 0x1b7   :  { %v346_v12 = vadd.f32 %v1569_v7, %v335_v11 }
 0x1b9   :  { %v350_v14 = vmax.f32 %v346_v12, 0.0 }
 0x1bb   :  { %v371_v15 = vpack.c.bf16 %v350_v14, %v349_v13  ;;  %v354_v28 = vrot.slane %v350_v14, 7 }
 0x1bc   :  { %v337_v16 = vpop.f32.mrf.mxu2 }
 0x1bd   :  { %1344 = vmatmul.msk.bf16.vlgmr.msra.gmra.mxu3 %vm390_vm8, %v371_v15  ;;  %v338_v17 = vadd.f32 %v337_v16, %v288_v0  ;;  %v359_v30 = vsel %vm201_vm5, %v353_v26, %v354_v28  ;;  %v514_v0 = vpop.f32.mrf.mxu1 }
 0x1be   :  { %v515_v11 = vadd.f32 %v1568_v53, %v514_v0 }
 0x1bf   :  { %v347_v19 = vadd.f32 %v1569_v7, %v338_v17 }
 0x1c1   :  { %v351_v22 = vmax.f32 %v347_v19, 0.0 }
 0x1c3   :  { %v355_v32 = vrot.slane %v351_v22, 7 }
 0x1c4   :  { %v339_v18 = vpop.f32.mrf.mxu2 }
 0x1c5   :  { %v340_v20 = vadd.f32 %v339_v18, %v290_v2  ;;  %v358_v33 = vsel %vm201_vm5, %v354_v28, %v355_v32  ;;  %v516_v10 = vpop.f32.mrf.mxu1 }
 0x1c6   :  { %v363_v35 = vsel %vm208_vm7, %v358_v33, 0.0  ;;  %v517_v13 = vadd.f32 %v1568_v53, %v516_v10  ;;  %v1539_v33 = vld [vmem:[%s2123_s10 + $0x8] sm:$0xff] }
 0x1c7   :  { %v348_v21 = vadd.f32 %v1569_v7, %v340_v20  ;;  %738 = vmatpush.bf16.msra.mxu1 %v1539_v33 }
 0x1c9   :  { %v352_v23 = vmax.f32 %v348_v21, 0.0 }
 0x1cb   :  { %v372_v24 = vpack.c.bf16 %v352_v23, %v351_v22  ;;  %v356_v25 = vrot.slane %v352_v23, 7 }
 0x1cd   :  { %1345 = vmatmul.msk.bf16.gmra.mxu3 %vm390_vm8, %v372_v24  ;;  %v360_v27 = vsel %vm201_vm5, %v356_v25, %v353_v26  ;;  %v357_v34 = vsel %vm201_vm5, %v355_v32, %v356_v25  ;;  %v1541_v32 = vld [vmem:[%s2123_s10 + $0x18] sm:$0xff] }
 0x1ce   :  { %v361_v29 = vsel %vm206_vm6, %v360_v27, 0.0  ;;  %v366_v36 = vpack.c.bf16 %v357_v34, %v363_v35  ;;  %701 = vmatpush.bf16.msra.mxu3 %v1541_v32  ;;  %v1540_v34 = vld [vmem:[%s2123_s10 + $0x10] sm:$0xff]  ;;  %v1538_v35 = vld [vmem:[%s2123_s10] sm:$0xff] }
 0x1cf   :  { %v365_v31 = vpack.c.bf16 %v359_v30, %v361_v29  ;;  %739 = vmatpush.bf16.msra.mxu1 %v1538_v35 }
 0x1d2   :  { %702 = vmatpush.bf16.msra.mxu3 %v1540_v34 }
 0x1dd   :  { %1354 = vmatmul.msk.bf16.vlgmr.msrb.gmra.mxu3 %vm390_vm8, %v365_v31 }
 0x1ed   :  { %1355 = vmatmul.msk.bf16.gmra.mxu3 %vm390_vm8, %v366_v36 }
 0x240   :  { %v406_v37 = vpop.f32.mrf.mxu3 }
 0x248   :  { %v408_v38 = vpop.f32.mrf.mxu3 }
 0x250   :  { %v411_v40 = vpop.f32.mrf.mxu3 }
 0x258   :  { %v413_v43 = vpop.f32.mrf.mxu3 }
 0x260   :  { %v443_v45 = vpop.f32.mrf.mxu3 }
 0x261   :  { %v444_v48 = vadd.f32 %v443_v45, %v406_v37 }
 0x263   :  { %v456_v51 = vadd.f32 %v1570_v49, %v444_v48 }
 0x265   :  { %v460_v55 = vmax.f32 %v456_v51, 0.0 }
 0x267   :  { %v519_v61 = vadd.f32 %v510_v58, %v460_v55 }
 0x268   :  { %v445_v54 = vpop.f32.mrf.mxu3 }
 0x269   :  { %v446_v56 = vadd.f32 %v445_v54, %v408_v38  ;;  %v1886_v2 = vmax.f32 %v519_v61, 0.0 }
 0x26b   :  { %v457_v59 = vadd.f32 %v1570_v49, %v446_v56  ;;  %v529_v20 = vrot.slane %v1886_v2, 6 }
 0x26d   :  { %v461_v62 = vmax.f32 %v457_v59, 0.0 }
 0x26f   :  { %v520_v63 = vadd.f32 %v512_v60, %v461_v62 }
 0x270   :  { %v448_v1 = vpop.f32.mrf.mxu3 }
 0x271   :  { %v1888_v3 = vmax.f32 %v520_v63, 0.0  ;;  %v449_v4 = vadd.f32 %v448_v1, %v411_v40  ;;  %v1571_v40 = vld [vmem:[%s2122_s9] ss:$0 sm:$0xff] }
 0x273   :  { %v560_v5 = vpack.c.bf16 %v1888_v3, %v1886_v2  ;;  %v458_v6 = vadd.f32 %v1570_v49, %v449_v4  ;;  %v530_v19 = vrot.slane %v1888_v3, 6 }
 0x275   :  { %1386 = vmatmul.msk.bf16.vlgmr.msra.gmra.mxu2 %vm390_vm8, %v560_v5  ;;  %v462_v8 = vmax.f32 %v458_v6, 0.0  ;;  %v536_v24 = vsel %vm533_vm9, %v529_v20, %v530_v19 }
 0x277   :  { %v521_v14 = vadd.f32 %v515_v11, %v462_v8 }
 0x278   :  { %v450_v7 = vpop.f32.mrf.mxu3 }
 0x279   :  { %v451_v9 = vadd.f32 %v450_v7, %v413_v43  ;;  %v1893_v17 = vmax.f32 %v521_v14, 0.0  ;;  %v1543_v14 = vld [vmem:[%s2125_s12 + $0x8] sm:$0xff] }
 0x27a   :  { %871 = vmatpush.bf16.msra.mxu0 %v1543_v14 }
 0x27b   :  { %v459_v12 = vadd.f32 %v1570_v49, %v451_v9  ;;  %v531_v27 = vrot.slane %v1893_v17, 6 }
 0x27d   :  { %v463_v15 = vmax.f32 %v459_v12, 0.0  ;;  %v535_v28 = vsel %vm533_vm9, %v530_v19, %v531_v27  ;;  %v1545_v12 = vld [vmem:[%s2125_s12 + $0x18] sm:$0xff] }
 0x27e   :  { %v552_v30 = vsel %vm540_vm11, %v535_v28, 0.0  ;;  %834 = vmatpush.bf16.msrb.mxu2 %v1545_v12 }
 0x27f   :  { %v522_v16 = vadd.f32 %v517_v13, %v463_v15  ;;  %v1544_v13 = vld [vmem:[%s2125_s12 + $0x10] sm:$0xff] }
 0x281   :  { %v1895_v18 = vmax.f32 %v522_v16, 0.0 }
 0x282   :  { %835 = vmatpush.bf16.msrb.mxu2 %v1544_v13 }
 0x283   :  { %v532_v21 = vrot.slane %v1895_v18, 6  ;;  %v561_v22 = vpack.c.bf16 %v1895_v18, %v1893_v17 }
 0x285   :  { %1387 = vmatmul.msk.bf16.gmra.mxu2 %vm390_vm8, %v561_v22  ;;  %v537_v23 = vsel %vm533_vm9, %v532_v21, %v529_v20  ;;  %v534_v29 = vsel %vm533_vm9, %v531_v27, %v532_v21  ;;  %v1572_v20 = vld [vmem:[%s2124_s11] ss:$0 sm:$0xff] }
 0x286   :  { %v550_v25 = vsel %vm538_vm10, %v537_v23, 0.0  ;;  %v555_v31 = vpack.c.bf16 %v534_v29, %v552_v30  ;;  %v1542_v21 = vld [vmem:[%s2125_s12] sm:$0xff]  ;;  %1068 = vmatpush.bf16.msra.mxu2 %v1553_v47 }
 0x287   :  { %v554_v26 = vpack.c.bf16 %v536_v24, %v550_v25  ;;  %872 = vmatpush.bf16.msra.mxu0 %v1542_v21 }
 0x289   :  { %1396 = vmatmul.msk.bf16.vlgmr.msrb.gmra.mxu0 %vm390_vm8, %v554_v26 }
 0x28a   :  { %1069 = vmatpush.bf16.msra.mxu2 %v1552_v57 }
 0x299   :  { %1397 = vmatmul.msk.bf16.gmra.mxu0 %vm390_vm8, %v555_v31 }
 0x2f8   :  { %v594_v36 = vpop.f32.mrf.mxu2 }
 0x300   :  { %v596_v38 = vpop.f32.mrf.mxu2 }
 0x306   :  { %v631_v37 = vpop.f32.mrf.mxu0 }
 0x307   :  { %v632_v39 = vadd.f32 %v631_v37, %v594_v36 }
 0x308   :  { %v599_v49 = vpop.f32.mrf.mxu2 }
 0x309   :  { %v644_v42 = vadd.f32 %v1571_v40, %v632_v39 }
 0x30b   :  { %v648_v45 = vmax.f32 %v644_v42, 0.0 }
 0x30d   :  { %v652_v62 = vrot.slane %v648_v45, 6 }
 0x30e   :  { %v633_v41 = vpop.f32.mrf.mxu0 }
 0x30f   :  { %v634_v43 = vadd.f32 %v633_v41, %v596_v38 }
 0x310   :  { %v601_v53 = vpop.f32.mrf.mxu2 }
 0x311   :  { %v645_v44 = vadd.f32 %v1571_v40, %v634_v43 }
 0x313   :  { %v649_v48 = vmax.f32 %v645_v44, 0.0 }
 0x315   :  { %v670_v50 = vpack.c.bf16 %v649_v48, %v648_v45  ;;  %v653_v61 = vrot.slane %v649_v48, 6 }
 0x316   :  { %v636_v51 = vpop.f32.mrf.mxu0 }
 0x317   :  { %1410 = vmatmul.msk.bf16.vlgmr.msra.gmra.mxu3 %vm390_vm8, %v670_v50  ;;  %v637_v52 = vadd.f32 %v636_v51, %v599_v49  ;;  %v658_v4 = vsel %vm533_vm9, %v652_v62, %v653_v61 }
 0x319   :  { %v646_v55 = vadd.f32 %v1571_v40, %v637_v52 }
 0x31b   :  { %v650_v59 = vmax.f32 %v646_v55, 0.0 }
 0x31d   :  { %v654_v7 = vrot.slane %v650_v59, 6 }
 0x31e   :  { %v638_v54 = vpop.f32.mrf.mxu0 }
 0x31f   :  { %v639_v56 = vadd.f32 %v638_v54, %v601_v53  ;;  %v657_v8 = vsel %vm533_vm9, %v653_v61, %v654_v7  ;;  %v1547_v61 = vld [vmem:[%s2127_s14 + $0x8] sm:$0xff] }
 0x320   :  { %v662_v10 = vsel %vm540_vm11, %v657_v8, 0.0  ;;  %981 = vmatpush.bf16.msrb.mxu1 %v1547_v61 }
 0x321   :  { %v647_v58 = vadd.f32 %v1571_v40, %v639_v56 }
 0x323   :  { %v651_v60 = vmax.f32 %v647_v58, 0.0 }
 0x325   :  { %v655_v63 = vrot.slane %v651_v60, 6  ;;  %v671_v0 = vpack.c.bf16 %v651_v60, %v650_v59  ;;  %v1549_v60 = vld [vmem:[%s2127_s14 + $0x18] sm:$0xff] }
 0x326   :  { %944 = vmatpush.bf16.msrb.mxu3 %v1549_v60 }
 0x327   :  { %v659_v1 = vsel %vm533_vm9, %v655_v63, %v652_v62  ;;  %1411 = vmatmul.msk.bf16.gmra.mxu3 %vm390_vm8, %v671_v0  ;;  %v656_v9 = vsel %vm533_vm9, %v654_v7, %v655_v63  ;;  %v1548_v62 = vld [vmem:[%s2127_s14 + $0x10] sm:$0xff]  ;;  %v1546_v63 = vld [vmem:[%s2127_s14] sm:$0xff] }
 0x328   :  { %v660_v5 = vsel %vm538_vm10, %v659_v1, 0.0  ;;  %v665_v11 = vpack.c.bf16 %v656_v9, %v662_v10  ;;  %982 = vmatpush.bf16.msrb.mxu1 %v1546_v63 }
 0x329   :  { %v664_v6 = vpack.c.bf16 %v658_v4, %v660_v5 }
 0x32a   :  { %945 = vmatpush.bf16.msrb.mxu3 %v1548_v62 }
 0x32b   :  { %1420 = vmatmul.msk.bf16.vlgmr.msra.gmra.mxu1 %vm390_vm8, %v664_v6  ;;  %v1573_v6 = vld [vmem:[%s2126_s13] ss:$0 sm:$0xff] }
 0x33b   :  { %1421 = vmatmul.msk.bf16.gmra.mxu1 %vm390_vm8, %v665_v11 }
 0x39a   :  { %v704_v15 = vpop.f32.mrf.mxu3 }
 0x3a2   :  { %v706_v22 = vpop.f32.mrf.mxu3 }
 0x3a8   :  { %v741_v16 = vpop.f32.mrf.mxu1 }
 0x3a9   :  { %v742_v19 = vadd.f32 %v741_v16, %v704_v15 }
 0x3aa   :  { %v709_v30 = vpop.f32.mrf.mxu3 }
 0x3ab   :  { %v754_v23 = vadd.f32 %v1572_v20, %v742_v19 }
 0x3ad   :  { %v758_v25 = vmax.f32 %v754_v23, 0.0 }
 0x3af   :  { %v762_v28 = vadd.f32 %v758_v25, %v1886_v2 }
 0x3b0   :  { %v743_v24 = vpop.f32.mrf.mxu1 }
 0x3b1   :  { %v744_v26 = vadd.f32 %v743_v24, %v706_v22  ;;  %v1969_v33 = vmax.f32 %v762_v28, 0.0 }
 0x3b2   :  { %v711_v38 = vpop.f32.mrf.mxu3 }
 0x3b3   :  { %v755_v27 = vadd.f32 %v1572_v20, %v744_v26  ;;  %v772_v49 = vrot.slane %v1969_v33, 4 }
 0x3b5   :  { %v759_v29 = vmax.f32 %v755_v27, 0.0 }
 0x3b7   :  { %v763_v31 = vadd.f32 %v759_v29, %v1888_v3 }
 0x3b8   :  { %v746_v32 = vpop.f32.mrf.mxu1 }
 0x3b9   :  { %v1971_v34 = vmax.f32 %v763_v31, 0.0  ;;  %v747_v35 = vadd.f32 %v746_v32, %v709_v30 }
 0x3bb   :  { %v803_v36 = vpack.c.bf16 %v1971_v34, %v1969_v33  ;;  %v756_v37 = vadd.f32 %v1572_v20, %v747_v35  ;;  %v773_v48 = vrot.slane %v1971_v34, 4 }
 0x3bd   :  { %1434 = vmatmul.msk.bf16.vlgmr.msrb.gmra.mxu2 %vm390_vm8, %v803_v36  ;;  %v760_v40 = vmax.f32 %v756_v37, 0.0 }
 0x3bf   :  { %v764_v42 = vadd.f32 %v760_v40, %v1893_v17 }
 0x3c0   :  { %v748_v39 = vpop.f32.mrf.mxu1 }
 0x3c1   :  { %v749_v2 = vadd.f32 %v748_v39, %v711_v38  ;;  %v1978_v44 = vmax.f32 %v764_v42, 0.0  ;;  %v1574_v42 = vld [vmem:[%s2128_s15] ss:$0 sm:$0xff] }
 0x3c3   :  { %v757_v41 = vadd.f32 %v1572_v20, %v749_v2  ;;  %v774_v54 = vrot.slane %v1978_v44, 4  ;;  %v1551_v2 = vld [vmem:[%s2129_s16 + $0x8] sm:$0xff] }
 0x3c4   :  { %1105 = vmatpush.bf16.msrb.mxu0 %v1551_v2 }
 0x3c5   :  { %v761_v3 = vmax.f32 %v757_v41, 0.0  ;;  %v778_v55 = vsel %vm776_vm12, %v773_v48, %v774_v54 }
 0x3c6   :  { %v795_v58 = vsel %vm783_vm14, %v778_v55, 0.0 }
 0x3c7   :  { %v765_v43 = vadd.f32 %v761_v3, %v1895_v18  ;;  %v779_v18 = vsel %vm776_vm12, %v772_v49, %v773_v48 }
 0x3c8   :  { %1106 = vmatpush.bf16.msrb.mxu0 %v1550_v46 }
 0x3c9   :  { %v1980_v45 = vmax.f32 %v765_v43, 0.0 }
 0x3cb   :  { %v775_v50 = vrot.slane %v1980_v45, 4  ;;  %v804_v51 = vpack.c.bf16 %v1980_v45, %v1978_v44 }
 0x3cd   :  { %1435 = vmatmul.msk.bf16.gmra.mxu2 %vm390_vm8, %v804_v51  ;;  %v780_v17 = vsel %vm776_vm12, %v775_v50, %v772_v49  ;;  %v777_v56 = vsel %vm776_vm12, %v774_v54, %v775_v50  ;;  %v1557_v51 = vld [vmem:[%s2131_s18 + $0x18] sm:$0xff]  ;;  %v1605_v54 = vmov 0.0  }
 0x3ce   :  { %v793_v52 = vsel %vm781_vm13, %v780_v17, 0.0  ;;  %v798_v59 = vpack.c.bf16 %v777_v56, %v795_v58  ;;  %1170 = vmatpush.bf16.msra.mxu3 %v1557_v51 }
 0x3cf   :  { %v797_v53 = vpack.c.bf16 %v779_v18, %v793_v52 }
 0x3d1   :  { %1444 = vmatmul.msk.bf16.vlgmr.msra.gmra.mxu0 %vm390_vm8, %v797_v53 }
 0x3e1   :  { %1445 = vmatmul.msk.bf16.gmra.mxu0 %vm390_vm8, %v798_v59 }
 0x440   :  { %v837_v0 = vpop.f32.mrf.mxu2 }
 0x448   :  { %v839_v4 = vpop.f32.mrf.mxu2 }
 0x44e   :  { %v874_v1 = vpop.f32.mrf.mxu0 }
 0x44f   :  { %v875_v5 = vadd.f32 %v874_v1, %v837_v0 }
 0x450   :  { %v842_v13 = vpop.f32.mrf.mxu2 }
 0x451   :  { %v887_v8 = vadd.f32 %v1573_v6, %v875_v5 }
 0x453   :  { %v891_v11 = vmax.f32 %v887_v8, 0.0 }
 0x455   :  { %v895_v27 = vrot.slane %v891_v11, 4 }
 0x456   :  { %v876_v7 = vpop.f32.mrf.mxu0 }
 0x457   :  { %v877_v9 = vadd.f32 %v876_v7, %v839_v4 }
 0x458   :  { %v844_v19 = vpop.f32.mrf.mxu2 }
 0x459   :  { %v888_v10 = vadd.f32 %v1573_v6, %v877_v9 }
 0x45b   :  { %v892_v12 = vmax.f32 %v888_v10, 0.0 }
 0x45d   :  { %v913_v14 = vpack.c.bf16 %v892_v12, %v891_v11  ;;  %v896_v26 = vrot.slane %v892_v12, 4 }
 0x45e   :  { %v879_v15 = vpop.f32.mrf.mxu0 }
 0x45f   :  { %1458 = vmatmul.msk.bf16.vlgmr.msrb.gmra.mxu3 %vm390_vm8, %v913_v14  ;;  %v880_v16 = vadd.f32 %v879_v15, %v842_v13  ;;  %v901_v31 = vsel %vm776_vm12, %v895_v27, %v896_v26  ;;  %v1555_v13 = vld [vmem:[%s2131_s18 + $0x8] sm:$0xff]  ;;  %v1554_v14 = vld [vmem:[%s2131_s18] sm:$0xff] }
 0x460   :  { %1207 = vmatpush.bf16.msra.mxu1 %v1555_v13 }
 0x461   :  { %v889_v21 = vadd.f32 %v1573_v6, %v880_v16  ;;  %v1575_v16 = vld [vmem:[%s2130_s17] ss:$0 sm:$0xff] }
 0x463   :  { %v893_v24 = vmax.f32 %v889_v21, 0.0 }
 0x464   :  { %1208 = vmatpush.bf16.msra.mxu1 %v1554_v14 }
 0x465   :  { %v897_v36 = vrot.slane %v893_v24, 4 }
 0x466   :  { %v881_v20 = vpop.f32.mrf.mxu0 }
 0x467   :  { %v882_v22 = vadd.f32 %v881_v20, %v844_v19  ;;  %v900_v37 = vsel %vm776_vm12, %v896_v26, %v897_v36 }
 0x468   :  { %v905_v39 = vsel %vm783_vm14, %v900_v37, 0.0 }
 0x469   :  { %v890_v23 = vadd.f32 %v1573_v6, %v882_v22 }
 0x46b   :  { %v894_v25 = vmax.f32 %v890_v23, 0.0 }
 0x46d   :  { %v898_v28 = vrot.slane %v894_v25, 4  ;;  %v914_v29 = vpack.c.bf16 %v894_v25, %v893_v24 }
 0x46f   :  { %v902_v30 = vsel %vm776_vm12, %v898_v28, %v895_v27  ;;  %1459 = vmatmul.msk.bf16.gmra.mxu3 %vm390_vm8, %v914_v29  ;;  %v899_v38 = vsel %vm776_vm12, %v897_v36, %v898_v28 }
 0x470   :  { %v903_v32 = vsel %vm781_vm13, %v902_v30, 0.0  ;;  %v908_v40 = vpack.c.bf16 %v899_v38, %v905_v39 }
 0x471   :  { %v907_v35 = vpack.c.bf16 %v901_v31, %v903_v32 }
 0x473   :  { %1468 = vmatmul.msk.bf16.vlgmr.msrb.gmra.mxu1 %vm390_vm8, %v907_v35 }
 0x483   :  { %1469 = vmatmul.msk.bf16.gmra.mxu1 %vm390_vm8, %v908_v40 }
 0x4e2   :  { %v947_v41 = vpop.f32.mrf.mxu3 }
 0x4ea   :  { %v949_v49 = vpop.f32.mrf.mxu3 }
 0x4f0   :  { %v984_v3 = vpop.f32.mrf.mxu1 }
 0x4f1   :  { %v985_v43 = vadd.f32 %v984_v3, %v947_v41  ;;  %v1576_v3 = vld [vmem:[%s2132_s19] ss:$0 sm:$0xff]  ;;  %s1606_s19 = smov [#allocation2]  }
 0x4f2   :  { %v952_v59 = vpop.f32.mrf.mxu3  ;;  %s1269_s5 = sshll.u32 %s1606_s19, 4  ;;  %s1270_s5 = int_to_ptr.vmem [resolvable:$true] %s1269_s5 }
 0x4f3   :  { %v997_v48 = vadd.f32 %v1574_v42, %v985_v43 }
 0x4f5   :  { %v1001_v50 = vmax.f32 %v997_v48, 0.0 }
 0x4f7   :  { %v1005_v17 = vadd.f32 %v1001_v50, %v1969_v33 }
 0x4f8   :  { %v986_v18 = vpop.f32.mrf.mxu1 }
 0x4f9   :  { %v2056_v52 = vmax.f32 %v1005_v17, 0.0  ;;  %v987_v53 = vadd.f32 %v986_v18, %v949_v49 }
 0x4fa   :  { %v954_v5 = vpop.f32.mrf.mxu3 }
 0x4fb   :  { %v1031_v55 = vpack.c.bf16 %v2056_v52, %v1605_v54  ;;  %v998_v56 = vadd.f32 %v1574_v42, %v987_v53 }
 0x4fd   :  { %v1002_v58 = vmax.f32 %v998_v56, 0.0  ;;  %1492 = vmatmul.msk.bf16.vlgmr.msrb.gmra.mxu0 %vm390_vm8, %v1031_v55 }
 0x4ff   :  { %v2061_v60 = vadd.f32 %v1002_v58, %v1971_v34 }
 0x500   :  { %v989_v61 = vpop.f32.mrf.mxu1 }
 0x501   :  { %v1010_v62 = vmax.f32 %v2061_v60, 0.0  ;;  %v990_v33 = vadd.f32 %v989_v61, %v952_v59 }
 0x503   :  { %v1037_v63 = vpack.c.bf16 %v1010_v62, %v2056_v52  ;;  %v999_v0 = vadd.f32 %v1574_v42, %v990_v33 }
 0x505   :  { %v1003_v1 = vmax.f32 %v999_v0, 0.0  ;;  %1482 = vmatmul.msk.bf16.vlgmr.msra.gmra.mxu2 %vm390_vm8, %v1037_v63 }
 0x507   :  { %v1007_v4 = vadd.f32 %v1003_v1, %v1978_v44 }
 0x508   :  { %v991_v6 = vpop.f32.mrf.mxu1 }
 0x509   :  { %v2069_v7 = vmax.f32 %v1007_v4, 0.0  ;;  %v992_v34 = vadd.f32 %v991_v6, %v954_v5 }
 0x50b   :  { %v1000_v8 = vadd.f32 %v1574_v42, %v992_v34  ;;  %v1032_v9 = vpack.c.bf16 %v2069_v7, %v1605_v54 }
 0x50d   :  { %v1004_v10 = vmax.f32 %v1000_v8, 0.0  ;;  %1493 = vmatmul.msk.bf16.gmra.mxu0 %vm390_vm8, %v1032_v9 }
 0x50f   :  { %v2074_v11 = vadd.f32 %v1004_v10, %v1980_v45  ;;  %v1556_v45 = vld [vmem:[%s2131_s18 + $0x10] sm:$0xff] }
 0x510   :  { %1171 = vmatpush.bf16.msra.mxu3 %v1556_v45 }
 0x511   :  { %v1012_v12 = vmax.f32 %v2074_v11, 0.0 }
 0x513   :  { %v1038_v44 = vpack.c.bf16 %v1012_v12, %v2069_v7 }
 0x515   :  { %1483 = vmatmul.msk.bf16.gmra.mxu2 %vm390_vm8, %v1038_v44 }
 0x57a   :  { %v1108_v15 = vpop.f32.mrf.mxu0 }
 0x582   :  { %v1110_v22 = vpop.f32.mrf.mxu0 }
 0x588   :  { %v1071_v19 = vpop.f32.mrf.mxu2 }
 0x589   :  { %v1109_v20 = vadd.f32 %v1108_v15, %v1071_v19 }
 0x58a   :  { %v1113_v29 = vpop.f32.mrf.mxu0 }
 0x58b   :  { %v1121_v21 = vadd.f32 %v1575_v16, %v1109_v20 }
 0x58d   :  { %v1125_v23 = vmax.f32 %v1121_v21, 0.0 }
 0x58f   :  { %v1133_v24 = vpack.c.bf16 %v1125_v23, %v1605_v54 }
 0x590   :  { %v1073_v25 = vpop.f32.mrf.mxu2 }
 0x591   :  { %v1111_v26 = vadd.f32 %v1110_v22, %v1073_v25  ;;  %1516 = vmatmul.msk.bf16.vlgmr.msra.gmra.mxu1 %vm390_vm8, %v1133_v24 }
 0x592   :  { %v1115_v38 = vpop.f32.mrf.mxu0 }
 0x593   :  { %v1122_v27 = vadd.f32 %v1575_v16, %v1111_v26 }
 0x595   :  { %v1126_v28 = vmax.f32 %v1122_v27, 0.0 }
 0x597   :  { %v1139_v30 = vpack.c.bf16 %v1126_v28, %v1125_v23 }
 0x598   :  { %v1076_v31 = vpop.f32.mrf.mxu2 }
 0x599   :  { %v1114_v32 = vadd.f32 %v1113_v29, %v1076_v31  ;;  %1506 = vmatmul.msk.bf16.vlgmr.msra.gmra.mxu3 %vm390_vm8, %v1139_v30 }
 0x59b   :  { %v1123_v35 = vadd.f32 %v1575_v16, %v1114_v32 }
 0x59d   :  { %v1127_v36 = vmax.f32 %v1123_v35, 0.0 }
 0x59f   :  { %v1134_v37 = vpack.c.bf16 %v1127_v36, %v1605_v54 }
 0x5a0   :  { %v1078_v39 = vpop.f32.mrf.mxu2 }
 0x5a1   :  { %v1116_v40 = vadd.f32 %v1115_v38, %v1078_v39  ;;  %1517 = vmatmul.msk.bf16.gmra.mxu1 %vm390_vm8, %v1134_v37 }
 0x5a3   :  { %v1124_v47 = vadd.f32 %v1575_v16, %v1116_v40 }
 0x5a5   :  { %v1128_v2 = vmax.f32 %v1124_v47, 0.0 }
 0x5a7   :  { %v1140_v46 = vpack.c.bf16 %v1128_v2, %v1127_v36 }
 0x5a9   :  { %1507 = vmatmul.msk.bf16.gmra.mxu3 %vm390_vm8, %v1140_v46 }
 0x60e   :  { %v1210_v57 = vpop.f32.mrf.mxu1 }
 0x616   :  { %v1212_v43 = vpop.f32.mrf.mxu1 }
 0x61c   :  { %v1173_v41 = vpop.f32.mrf.mxu3 }
 0x61d   :  { %v1211_v42 = vadd.f32 %v1210_v57, %v1173_v41 }
 0x61e   :  { %v1215_v53 = vpop.f32.mrf.mxu1 }
 0x61f   :  { %v1223_v48 = vadd.f32 %v1576_v3, %v1211_v42 }
 0x621   :  { %v1227_v51 = vmax.f32 %v1223_v48, 0.0 }
 0x623   :  { %v1231_v54 = vadd.f32 %v1227_v51, %v2056_v52 }
 0x624   :  { %v1175_v49 = vpop.f32.mrf.mxu3 }
 0x625   :  { %v1213_v50 = vadd.f32 %v1212_v43, %v1175_v49  ;;  %v1235_v61 = vmax.f32 %v1231_v54, 0.0 }
 0x626   :  { %v1217_v5 = vpop.f32.mrf.mxu1 }
 0x627   :  { %v1224_v17 = vadd.f32 %v1576_v3, %v1213_v50  ;;  %v1239_v0 = vsel %vm390_vm8, %v1235_v61, -inf }
 0x629   :  { %v1228_v18 = vmax.f32 %v1224_v17, 0.0 }
 0x62b   :  { %v1232_v55 = vadd.f32 %v1228_v18, %v1010_v62 }
 0x62c   :  { %v1178_v56 = vpop.f32.mrf.mxu3 }
 0x62d   :  { %v1236_v58 = vmax.f32 %v1232_v55, 0.0  ;;  %v1216_v59 = vadd.f32 %v1215_v53, %v1178_v56 }
 0x62f   :  { %v1225_v33 = vadd.f32 %v1576_v3, %v1216_v59  ;;  %v1240_v63 = vsel %vm390_vm8, %v1236_v58, -inf }
 0x630   :  { %v1241_v4 = vmax.f32 %v1239_v0, %v1240_v63 }
 0x631   :  { %v1229_v1 = vmax.f32 %v1225_v33, 0.0 }
 0x632   :  { %v1242_v9 = vrot.slane %v1241_v4, 4 }
 0x633   :  { %v1233_v8 = vadd.f32 %v1229_v1, %v2069_v7 }
 0x634   :  { %v1180_v6 = vpop.f32.mrf.mxu3  ;;  %v1243_v44 = vmax.f32 %v1241_v4, %v1242_v9 }
 0x635   :  { %v1218_v34 = vadd.f32 %v1217_v5, %v1180_v6  ;;  %v1237_v62 = vmax.f32 %v1233_v8, 0.0 }
 0x636   :  { %v1244_v15 = vrot.slane %v1243_v44, 2 }
 0x637   :  { %v1226_v52 = vadd.f32 %v1576_v3, %v1218_v34  ;;  %v1248_v14 = vsel %vm390_vm8, %v1237_v62, -inf }
 0x638   :  { %v1245_v21 = vmax.f32 %v1243_v44, %v1244_v15 }
 0x639   :  { %v1230_v60 = vmax.f32 %v1226_v52, 0.0 }
 0x63a   :  { %v1246_v7 = vrot.slane %v1245_v21, 1 }
 0x63b   :  { %v1234_v10 = vadd.f32 %v1230_v60, %v1012_v12 }
 0x63c   :  { %v1247_v11 = vmax.f32 %v1245_v21, %v1246_v7 }
 0x63d   :  { %v1238_v13 = vmax.f32 %v1234_v10, 0.0 }
 0x63f   :  { %v1249_v45 = vsel %vm390_vm8, %v1238_v13, -inf }
 0x640   :  { %v1250_v16 = vmax.f32 %v1248_v14, %v1249_v45 }
 0x642   :  { %v1251_v19 = vrot.slane %v1250_v16, 4 }
 0x644   :  { %v1252_v20 = vmax.f32 %v1250_v16, %v1251_v19 }
 0x646   :  { %v1253_v22 = vrot.slane %v1252_v20, 2 }
 0x648   :  { %v1254_v23 = vmax.f32 %v1252_v20, %v1253_v22 }
 0x64a   :  { %v1255_v24 = vrot.slane %v1254_v23, 1 }
 0x64c   :  { %v1256_v12 = vmax.f32 %v1254_v23, %v1255_v24 }
 0x64e   :  { %v1260_v25 = vsel %vm1259_vm15, %v1256_v12, %v1247_v11 }
 0x64f   :  { %1263 = vst.msk [vmem:[#allocation2] sm:$0x3] %vm1262_vm0, %v1260_v25 }
 0x650   :  { %1274 = dma.vmem_to_hbm [thread:$0]  %s1270_s5, 32, %s1272_s26, [#allocation3]  }
 0x651   :  { %1601 = dma.done.wait [#allocation3], 32  }
 0x652   :  { %1602 = vsyncadd [#allocation3], 4294967264 }
 0x653   :  { %1279 = vsyncpa [#allocation3], 1 }

</bundles_post_ra>
